<compile_context>
chip_gen: v6e
topology: v6e:2x2x1
jax: 0.10.0
libtpu: 0.0.40
codegen_flags: <defaults>
</compile_context>

<pallas_src>
import functools

import numpy as np
import jax
import jax.numpy as jnp
from jax.experimental import pallas as pl
from jax.experimental.pallas import tpu as pltpu


# ----------------------------------------------------------------------------- fused kernel

def _block_kernel(kw, L, h_ref, pos_ref, w_ref, m_ref, sc_ref, aw_ref, ab_ref,
                  w1_ref, b1_ref, w2_ref, b2_ref, hout_ref, lds_ref):
    """One grid step == one Flow. `hout_ref` / `lds_ref` carry state across flows."""
    f = pl.program_id(0)
    nsq, BL = hout_ref.shape
    nsq2 = nsq // 2
    ncha = w1_ref.shape[-1]
    r = ncha // nsq2
    pad = kw // 2

    @pl.when(f == 0)
    def _init():
        hout_ref[...] = h_ref[...]
        lds_ref[...] = jnp.zeros_like(lds_ref)

    pos = pos_ref[...]                       # (1, BL) int32: lane position within its batch

    def shift(x, off):
        # shifted[:, b*L + t] = x[:, b*L + (t+off)] if 0 <= t+off < L else 0  (per-batch zero pad)
        if off == 0:
            return x
        rolled = pltpu.roll(x, (-off) % BL, 1)          # circular shift on the XLU
        if off > 0:
            mask = pos < (L - off)
        else:
            mask = pos >= (-off)
        return jnp.where(mask, rolled, 0.0)

    h = hout_ref[...]                                    # (nsq, BL), carried between flows
    # ---- InvConv: 1x1 conv == one channel-mixing matmul over all batches (MXU)
    h = jnp.dot(w_ref[0], h, preferred_element_type=jnp.float32)
    # ---- ActNorm
    h = sc_ref[0] * (h + m_ref[0])
    h1 = h[:nsq2, :]
    h2 = h[nsq2:, :]
    hout_ref[:nsq2, :] = h1                              # h1 passes through unchanged

    # ---- CouplingNet adapter: per-utterance depthwise kw-tap conv on r-repeated h1.
    # Repeat is implicit: x is built in q-major channel order (w1 columns permuted to match).
    sh = [shift(h1, k - pad) for k in range(kw)]         # kw x (nsq2, BL)
    blocks = []
    for q in range(r):
        lo = q * nsq2
        acc = ab_ref[0, lo:lo + nsq2, :]
        for k in range(kw):
            acc = acc + aw_ref[0, k, lo:lo + nsq2, :] * sh[k]
        blocks.append(acc)
    x = jnp.maximum(jnp.concatenate(blocks, axis=0), 0.0)     # ReLU, (ncha, BL)

    # ---- 1x1 conv + ReLU: one batched matmul
    y = jnp.dot(w1_ref[0], x, preferred_element_type=jnp.float32) + b1_ref[0]
    y = jnp.maximum(y, 0.0)

    # ---- final kw-tap conv folded into ONE K = kw*ncha matmul
    ystack = jnp.concatenate([shift(y, k - pad) for k in range(kw)], axis=0)
    out = jnp.dot(w2_ref[0], ystack, preferred_element_type=jnp.float32) + b2_ref[0]

    # ---- affine coupling: s = sigmoid(out_s + 2) + 1e-7 (exp + reciprocal on EUP)
    s = pl.reciprocal(1.0 + jnp.exp(-(out[:nsq2, :] + 2.0))) + 1e-7
    mc = out[nsq2:, :]
    hout_ref[nsq2:, :] = s * (h2 + mc)
    # channel-reduced coupling log-det, accumulated across flows
    lds_ref[...] = lds_ref[...] + jnp.sum(jnp.log(s), axis=0, keepdims=True)


# ----------------------------------------------------------------------------- wrappers

def calc_weight(p):
    nsq = p['w_p'].shape[0]
    l = p['w_l'] * p['l_mask'] + jnp.eye(nsq, dtype=jnp.float32)
    u = p['w_u'] * p['u_mask'] + jnp.diag(p['s_sign'] * jnp.exp(p['w_s']))
    return p['w_p'] @ l @ u


def _prep_flow(p, emb, L, kw):
    """Tiny per-flow parameter glue (plain JAX, hoisted out of the kernel)."""
    B = emb.shape[0]
    ncha = p['w1'].shape[0]
    nsq = p['m'].shape[0]
    nsq2 = nsq // 2
    r = ncha // nsq2
    BL = B * L

    W = calc_weight(p)
    m2 = p['m'][:, None]
    sc = jnp.exp(p['logs'])[:, None]

    # q-major channel permutation: new row q*nsq2 + j  <-  original channel j*r + q
    perm = (jnp.arange(nsq2)[None, :] * r + jnp.arange(r)[:, None]).reshape(-1)

    aw = (emb @ p['adapt_w_w'].T + p['adapt_w_b']).reshape(B, ncha, kw)[:, perm, :]
    ab = (emb @ p['adapt_b_w'].T + p['adapt_b_b'])[:, perm]
    # broadcast per-utterance adapter params along each batch's length-L lane block
    AW = jnp.broadcast_to(jnp.transpose(aw, (2, 1, 0))[..., None],
                          (kw, ncha, B, L)).reshape(kw, ncha, BL)
    AB = jnp.broadcast_to(ab.T[:, :, None], (ncha, B, L)).reshape(ncha, BL)

    w1p = p['w1'][:, perm]                                      # columns permuted to q-major
    b1 = p['b1'][:, None]
    w2f = jnp.transpose(p['w2'], (0, 2, 1)).reshape(2 * nsq2, kw * ncha)   # (o, k*ncha + c)
    b2 = p['b2'][:, None]
    ld_scalar = (jnp.sum(p['w_s']) + jnp.sum(p['logs'])) * L    # InvConv + ActNorm logdet
    return W, m2, sc, AW, AB, w1p, b1, w2f, b2, ld_scalar


def block_forward_impl(h, emb, flow_params, kw=3):
    B, nsq, L = h.shape
    nsq2 = nsq // 2
    ncha = flow_params[0]['w1'].shape[0]
    nflows = len(flow_params)
    BL = B * L

    prepped = [_prep_flow(p, emb, L, kw) for p in flow_params]
    stacked = [jnp.stack(xs) for xs in zip(*prepped)]
    Wst, mst, scst, AWst, ABst, w1st, b1st, w2st, b2st, ldsc = stacked

    h_t = jnp.transpose(h, (1, 0, 2)).reshape(nsq, BL)
    pos = jnp.broadcast_to(jnp.arange(L, dtype=jnp.int32)[None, :], (B, L)).reshape(1, BL)

    def fixed(shape):
        return pl.BlockSpec(shape, lambda f: (0,) * len(shape))

    def per_flow(shape):
        return pl.BlockSpec((1,) + shape, lambda f: (f,) + (0,) * len(shape))

    grid_spec = pltpu.PrefetchScalarGridSpec(
        num_scalar_prefetch=0,
        grid=(nflows,),
        in_specs=[
            fixed((nsq, BL)),                   # h (read only at flow 0)
            fixed((1, BL)),                     # per-batch lane positions
            per_flow((nsq, nsq)),               # InvConv W
            per_flow((nsq, 1)),                 # ActNorm m
            per_flow((nsq, 1)),                 # ActNorm exp(logs)
            per_flow((kw, ncha, BL)),           # adapter weights (q-major, lane-broadcast)
            per_flow((ncha, BL)),               # adapter bias
            per_flow((ncha, ncha)),             # w1 (columns permuted to q-major)
            per_flow((ncha, 1)),                # b1
            per_flow((2 * nsq2, kw * ncha)),    # w2 folded over taps
            per_flow((2 * nsq2, 1)),            # b2
        ],
        out_specs=(fixed((nsq, BL)), fixed((1, BL))),
    )

    hout_t, lds = pl.pallas_call(
        functools.partial(_block_kernel, kw, L),
        out_shape=(jax.ShapeDtypeStruct((nsq, BL), jnp.float32),
                   jax.ShapeDtypeStruct((1, BL), jnp.float32)),
        grid_spec=grid_spec,
        compiler_params=pltpu.CompilerParams(
            dimension_semantics=("arbitrary",)),     # flows are sequential (carried state)
    )(h_t, pos, Wst, mst, scst, AWst, ABst, w1st, b1st, w2st, b2st)

    h_out = jnp.transpose(hout_t.reshape(nsq, B, L), (1, 0, 2))
    log_det = jnp.sum(ldsc) + jnp.sum(lds.reshape(B, L), axis=1)
    return h_out, log_det


block_forward = jax.jit(block_forward_impl, static_argnames=("kw",))


# ----------------------------------------------------------------------------- pure-JAX reference

def flow_ref(h, emb, p, kw=3):
    B, nsq, L = h.shape
    nsq2 = nsq // 2
    ncha = p['w1'].shape[0]
    r = ncha // nsq2
    pad = kw // 2
    W = calc_weight(p)
    h = jnp.einsum('ij,bjl->bil', W, h)
    ld = jnp.sum(p['w_s']) * L
    h = jnp.exp(p['logs'])[None, :, None] * (h + p['m'][None, :, None])
    ld = ld + jnp.sum(p['logs']) * L
    h1, h2 = h[:, :nsq2], h[:, nsq2:]
    aw = (emb @ p['adapt_w_w'].T + p['adapt_w_b']).reshape(B, ncha, kw)
    ab = emb @ p['adapt_b_w'].T + p['adapt_b_b']
    h1r = jnp.repeat(h1, r, axis=1)
    h1p = jnp.pad(h1r, ((0, 0), (0, 0), (pad, pad)))
    pre = ab[:, :, None]
    for k in range(kw):
        pre = pre + aw[:, :, k][:, :, None] * h1p[:, :, k:k + L]
    x = jnp.maximum(pre, 0.0)
    y = jnp.einsum('oc,bcl->bol', p['w1'], x) + p['b1'][None, :, None]
    y = jnp.maximum(y, 0.0)
    yp = jnp.pad(y, ((0, 0), (0, 0), (pad, pad)))
    out = p['b2'][None, :, None]
    for k in range(kw):
        out = out + jnp.einsum('oc,bcl->bol', p['w2'][:, :, k], yp[:, :, k:k + L])
    s = 1.0 / (1.0 + jnp.exp(-(out[:, :nsq2] + 2.0))) + 1e-7
    mc = out[:, nsq2:]
    h = jnp.concatenate([h1, s * (h2 + mc)], axis=1)
    return h, ld + jnp.sum(jnp.log(s), axis=(1, 2))


def block_ref(h, emb, flow_params):
    log_det = jnp.zeros((h.shape[0],), jnp.float32)
    for p in flow_params:
        h, ld = flow_ref(h, emb, p)
        log_det = log_det + ld
    return h, log_det


# ----------------------------------------------------------------------------- params

def init_flow_params(key, nsq, ncha, semb, kw=3):
    nsq2 = nsq // 2
    ks = jax.random.split(key, 16)
    A = jax.random.normal(ks[0], (nsq, nsq), jnp.float32)
    w_p, _ = jnp.linalg.qr(A)
    u_mask = jnp.triu(jnp.ones((nsq, nsq), jnp.float32), 1)
    l_mask = u_mask.T
    return dict(
        # InvConv (same shapes / calc_weight formula as the PyTorch module)
        w_p=w_p,
        w_l=0.1 * jax.random.normal(ks[1], (nsq, nsq), jnp.float32),
        w_u=0.1 * jax.random.normal(ks[2], (nsq, nsq), jnp.float32),
        w_s=0.1 * jax.random.normal(ks[3], (nsq,), jnp.float32),
        s_sign=jnp.where(jax.random.bernoulli(ks[4], 0.5, (nsq,)), 1.0, -1.0).astype(jnp.float32),
        u_mask=u_mask, l_mask=l_mask,
        # TODO(synk): ActNorm's data-dependent first-forward init is stateful; we use fixed
        # deterministic params (post-init semantics: h = exp(logs) * (h + m)) instead.
        m=0.1 * jax.random.normal(ks[5], (nsq,), jnp.float32),
        logs=0.1 * jax.random.normal(ks[6], (nsq,), jnp.float32),
        # CouplingNet(nsq//2, ncha, semb)
        adapt_w_w=jax.random.normal(ks[7], (ncha * kw, semb), jnp.float32) / np.sqrt(semb),
        adapt_w_b=0.01 * jax.random.normal(ks[8], (ncha * kw,), jnp.float32),
        adapt_b_w=jax.random.normal(ks[9], (ncha, semb), jnp.float32) / np.sqrt(semb),
        adapt_b_b=0.01 * jax.random.normal(ks[10], (ncha,), jnp.float32),
        w1=jax.random.normal(ks[11], (ncha, ncha), jnp.float32) / np.sqrt(ncha),
        b1=0.01 * jax.random.normal(ks[12], (ncha,), jnp.float32),
        # PyTorch __init__ zeroes this conv; use small deterministic values for a non-trivial test.
        w2=0.1 * jax.random.normal(ks[13], (2 * nsq2, ncha, kw), jnp.float32) / np.sqrt(ncha * kw),
        b2=0.01 * jax.random.normal(ks[14], (2 * nsq2,), jnp.float32),
    )


# ----------------------------------------------------------------------------- main

if __name__ == "__main__":
    B, nsq, L = 2, 16, 64          # (batch, squeezed channels, chunk length); B*L = 128 lanes
    ncha, semb = 16, 32            # coupling hidden channels, speaker-embedding dim
    nflows = 2

    key = jax.random.PRNGKey(0)
    kh, ke, kp = jax.random.split(key, 3)
    h = jax.random.normal(kh, (B, nsq, L), jnp.float32)
    emb = jax.random.normal(ke, (B, semb), jnp.float32)
    flow_params = [init_flow_params(k, nsq, ncha, semb) for k in jax.random.split(kp, nflows)]

    h_out, log_det = block_forward(h, emb, flow_params)
    h_out = jax.block_until_ready(h_out)
    log_det = jax.block_until_ready(log_det)

    h_r, ld_r = block_ref(h, emb, flow_params)
    np.testing.assert_allclose(np.asarray(h_out), np.asarray(h_r), rtol=2e-3, atol=2e-3)
    np.testing.assert_allclose(np.asarray(log_det), np.asarray(ld_r), rtol=2e-3, atol=1e-2)

    print("KERNEL_OK")
</pallas_src>

<mosaic_0001>
module attributes {stable_mosaic.version = 11 : i64} {
  func.func @_block_kernel(%arg0: i32, %arg1: memref<16x128xf32, #tpu.memory_space<vmem>>, %arg2: memref<1x128xi32, #tpu.memory_space<vmem>>, %arg3: memref<1x16x16xf32, #tpu.memory_space<vmem>>, %arg4: memref<1x16x1xf32, #tpu.memory_space<vmem>>, %arg5: memref<1x16x1xf32, #tpu.memory_space<vmem>>, %arg6: memref<1x3x16x128xf32, #tpu.memory_space<vmem>>, %arg7: memref<1x16x128xf32, #tpu.memory_space<vmem>>, %arg8: memref<1x16x16xf32, #tpu.memory_space<vmem>>, %arg9: memref<1x16x1xf32, #tpu.memory_space<vmem>>, %arg10: memref<1x16x48xf32, #tpu.memory_space<vmem>>, %arg11: memref<1x16x1xf32, #tpu.memory_space<vmem>>, %arg12: memref<16x128xf32, #tpu.memory_space<vmem>>, %arg13: memref<1x128xf32, #tpu.memory_space<vmem>>) attributes {dimension_semantics = [#tpu.dimension_semantics<arbitrary>], iteration_bounds = array<i64: 2>, scalar_prefetch = 0 : i64, scratch_operands = 0 : i64, tpu.core_type = #tpu.core_type<tc>, window_params = [{pipeline_mode = #tpu.pipeline_mode<synchronous>, transform_indices = @transform_0, window_bounds = array<i64: 16, 128>}, {pipeline_mode = #tpu.pipeline_mode<synchronous>, transform_indices = @transform_1, window_bounds = array<i64: 1, 128>}, {transform_indices = @transform_2, window_bounds = array<i64: 1, 16, 16>}, {transform_indices = @transform_3, window_bounds = array<i64: 1, 16, 1>}, {transform_indices = @transform_4, window_bounds = array<i64: 1, 16, 1>}, {transform_indices = @transform_5, window_bounds = array<i64: 1, 3, 16, 128>}, {transform_indices = @transform_6, window_bounds = array<i64: 1, 16, 128>}, {transform_indices = @transform_7, window_bounds = array<i64: 1, 16, 16>}, {transform_indices = @transform_8, window_bounds = array<i64: 1, 16, 1>}, {transform_indices = @transform_9, window_bounds = array<i64: 1, 16, 48>}, {transform_indices = @transform_10, window_bounds = array<i64: 1, 16, 1>}, {pipeline_mode = #tpu.pipeline_mode<synchronous>, transform_indices = @transform_11, window_bounds = array<i64: 16, 128>}, {pipeline_mode = #tpu.pipeline_mode<synchronous>, transform_indices = @transform_12, window_bounds = array<i64: 1, 128>}]} {
    %c0_i32 = arith.constant 0 : i32
    %0 = arith.cmpi eq, %arg0, %c0_i32 : i32
    %1 = arith.extui %0 : i1 to i32
    %c0_i32_0 = arith.constant 0 : i32
    %2 = arith.cmpi ne, %1, %c0_i32_0 : i32
    scf.if %2 {
      %c0_78 = arith.constant 0 : index
      %c0_79 = arith.constant 0 : index
      %116 = vector.load %arg1[%c0_78, %c0_79] : memref<16x128xf32, #tpu.memory_space<vmem>>, vector<16x128xf32>
      %c0_80 = arith.constant 0 : index
      %c0_81 = arith.constant 0 : index
      %117 = vector.load %arg12[%c0_80, %c0_81] : memref<16x128xf32, #tpu.memory_space<vmem>>, vector<16x128xf32>
      tpu.vector_store %arg12[%c0_80, %c0_81], %116 {strides = array<i32>} : memref<16x128xf32, #tpu.memory_space<vmem>>, vector<16x128xf32>,
      %cst_82 = arith.constant 0.000000e+00 : f32
      %118 = vector.broadcast %cst_82 : f32 to vector<1x128xf32>
      %c0_83 = arith.constant 0 : index
      %c0_84 = arith.constant 0 : index
      %119 = vector.load %arg13[%c0_83, %c0_84] : memref<1x128xf32, #tpu.memory_space<vmem>>, vector<1x128xf32>
      tpu.vector_store %arg13[%c0_83, %c0_84], %118 {strides = array<i32>} : memref<1x128xf32, #tpu.memory_space<vmem>>, vector<1x128xf32>,
    } else {
    }
    %c0 = arith.constant 0 : index
    %c0_1 = arith.constant 0 : index
    %3 = vector.load %arg2[%c0, %c0_1] : memref<1x128xi32, #tpu.memory_space<vmem>>, vector<1x128xi32>
    %c0_2 = arith.constant 0 : index
    %c0_3 = arith.constant 0 : index
    %4 = vector.load %arg12[%c0_2, %c0_3] : memref<16x128xf32, #tpu.memory_space<vmem>>, vector<16x128xf32>
    %c0_4 = arith.constant 0 : index
    %c0_5 = arith.constant 0 : index
    %c0_6 = arith.constant 0 : index
    %5 = vector.load %arg3[%c0_4, %c0_5, %c0_6] : memref<1x16x16xf32, #tpu.memory_space<vmem>>, vector<1x16x16xf32>
    %6 = vector.shape_cast %5 : vector<1x16x16xf32> to vector<16x16xf32>
    %cst = arith.constant dense<0.000000e+00> : vector<16x128xf32>
    %7 = tpu.matmul %6, %4, %cst {dimension_numbers = #tpu.dot_dimension_numbers<[1], [0], [0], [1], [0, 0, 1, 1], [], []>} : vector<16x16xf32>, vector<16x128xf32>, vector<16x128xf32> -> vector<16x128xf32>
    %c0_7 = arith.constant 0 : index
    %c0_8 = arith.constant 0 : index
    %c0_9 = arith.constant 0 : index
    %8 = vector.load %arg5[%c0_7, %c0_8, %c0_9] : memref<1x16x1xf32, #tpu.memory_space<vmem>>, vector<1x16x1xf32>
    %9 = vector.shape_cast %8 : vector<1x16x1xf32> to vector<16x1xf32>
    %c0_10 = arith.constant 0 : index
    %c0_11 = arith.constant 0 : index
    %c0_12 = arith.constant 0 : index
    %10 = vector.load %arg4[%c0_10, %c0_11, %c0_12] : memref<1x16x1xf32, #tpu.memory_space<vmem>>, vector<1x16x1xf32>
    %11 = vector.shape_cast %10 : vector<1x16x1xf32> to vector<16x1xf32>
    %12 = vector.broadcast %11 : vector<16x1xf32> to vector<16x128xf32>
    %13 = arith.addf %7, %12 : vector<16x128xf32>
    %14 = vector.broadcast %9 : vector<16x1xf32> to vector<16x128xf32>
    %15 = arith.mulf %14, %13 : vector<16x128xf32>
    %16 = vector.extract_strided_slice %15 {offsets = [0, 0], sizes = [8, 128], strides = [1, 1]} : vector<16x128xf32> to vector<8x128xf32>
    %17 = vector.extract_strided_slice %15 {offsets = [8, 0], sizes = [8, 128], strides = [1, 1]} : vector<16x128xf32> to vector<8x128xf32>
    %c0_13 = arith.constant 0 : index
    %c0_14 = arith.constant 0 : index
    %18 = vector.load %arg12[%c0_13, %c0_14] : memref<16x128xf32, #tpu.memory_space<vmem>>, vector<8x128xf32>
    tpu.vector_store %arg12[%c0_13, %c0_14], %16 {strides = array<i32>} : memref<16x128xf32, #tpu.memory_space<vmem>>, vector<8x128xf32>,
    %c1_i32 = arith.constant 1 : i32
    %19 = tpu.dynamic_rotate %16 by %c1_i32 dim 1 : vector<8x128xf32>, i32 -> vector<8x128xf32>
    %c1_i32_15 = arith.constant 1 : i32
    %20 = vector.broadcast %c1_i32_15 : i32 to vector<1x128xi32>
    %21 = arith.cmpi sge, %3, %20 : vector<1x128xi32>
    %cst_16 = arith.constant 0.000000e+00 : f32
    %22 = vector.shape_cast %21 : vector<1x128xi1> to vector<1x128xi1>
    %23 = vector.broadcast %22 : vector<1x128xi1> to vector<8x128xi1>
    %24 = vector.broadcast %cst_16 : f32 to vector<8x128xf32>
    %25 = arith.select %23, %19, %24 : vector<8x128xi1>, vector<8x128xf32>
    %c127_i32 = arith.constant 127 : i32
    %26 = tpu.dynamic_rotate %16 by %c127_i32 dim 1 : vector<8x128xf32>, i32 -> vector<8x128xf32>
    %c63_i32 = arith.constant 63 : i32
    %27 = vector.broadcast %c63_i32 : i32 to vector<1x128xi32>
    %28 = arith.cmpi slt, %3, %27 : vector<1x128xi32>
    %cst_17 = arith.constant 0.000000e+00 : f32
    %29 = vector.shape_cast %28 : vector<1x128xi1> to vector<1x128xi1>
    %30 = vector.broadcast %29 : vector<1x128xi1> to vector<8x128xi1>
    %31 = vector.broadcast %cst_17 : f32 to vector<8x128xf32>
    %32 = arith.select %30, %26, %31 : vector<8x128xi1>, vector<8x128xf32>
    %c0_18 = arith.constant 0 : index
    %c0_19 = arith.constant 0 : index
    %c0_20 = arith.constant 0 : index
    %33 = vector.load %arg7[%c0_18, %c0_19, %c0_20] : memref<1x16x128xf32, #tpu.memory_space<vmem>>, vector<1x8x128xf32>
    %34 = vector.shape_cast %33 : vector<1x8x128xf32> to vector<8x128xf32>
    %c0_21 = arith.constant 0 : index
    %c0_22 = arith.constant 0 : index
    %c0_23 = arith.constant 0 : index
    %c0_24 = arith.constant 0 : index
    %35 = vector.load %arg6[%c0_21, %c0_22, %c0_23, %c0_24] : memref<1x3x16x128xf32, #tpu.memory_space<vmem>>, vector<1x1x8x128xf32>
    %36 = vector.shape_cast %35 : vector<1x1x8x128xf32> to vector<8x128xf32>
    %37 = arith.mulf %36, %25 : vector<8x128xf32>
    %38 = arith.addf %34, %37 : vector<8x128xf32>
    %c0_25 = arith.constant 0 : index
    %c1 = arith.constant 1 : index
    %c0_26 = arith.constant 0 : index
    %c0_27 = arith.constant 0 : index
    %39 = vector.load %arg6[%c0_25, %c1, %c0_26, %c0_27] : memref<1x3x16x128xf32, #tpu.memory_space<vmem>>, vector<1x1x8x128xf32>
    %40 = vector.shape_cast %39 : vector<1x1x8x128xf32> to vector<8x128xf32>
    %41 = arith.mulf %40, %16 : vector<8x128xf32>
    %42 = arith.addf %38, %41 : vector<8x128xf32>
    %c0_28 = arith.constant 0 : index
    %c2 = arith.constant 2 : index
    %c0_29 = arith.constant 0 : index
    %c0_30 = arith.constant 0 : index
    %43 = vector.load %arg6[%c0_28, %c2, %c0_29, %c0_30] : memref<1x3x16x128xf32, #tpu.memory_space<vmem>>, vector<1x1x8x128xf32>
    %44 = vector.shape_cast %43 : vector<1x1x8x128xf32> to vector<8x128xf32>
    %45 = arith.mulf %44, %32 : vector<8x128xf32>
    %46 = arith.addf %42, %45 : vector<8x128xf32>
    %c0_31 = arith.constant 0 : index
    %c8 = arith.constant 8 : index
    %c0_32 = arith.constant 0 : index
    %47 = vector.load %arg7[%c0_31, %c8, %c0_32] : memref<1x16x128xf32, #tpu.memory_space<vmem>>, vector<1x8x128xf32>
    %48 = vector.shape_cast %47 : vector<1x8x128xf32> to vector<8x128xf32>
    %c0_33 = arith.constant 0 : index
    %c0_34 = arith.constant 0 : index
    %c8_35 = arith.constant 8 : index
    %c0_36 = arith.constant 0 : index
    %49 = vector.load %arg6[%c0_33, %c0_34, %c8_35, %c0_36] : memref<1x3x16x128xf32, #tpu.memory_space<vmem>>, vector<1x1x8x128xf32>
    %50 = vector.shape_cast %49 : vector<1x1x8x128xf32> to vector<8x128xf32>
    %51 = arith.mulf %50, %25 : vector<8x128xf32>
    %52 = arith.addf %48, %51 : vector<8x128xf32>
    %c0_37 = arith.constant 0 : index
    %c1_38 = arith.constant 1 : index
    %c8_39 = arith.constant 8 : index
    %c0_40 = arith.constant 0 : index
    %53 = vector.load %arg6[%c0_37, %c1_38, %c8_39, %c0_40] : memref<1x3x16x128xf32, #tpu.memory_space<vmem>>, vector<1x1x8x128xf32>
    %54 = vector.shape_cast %53 : vector<1x1x8x128xf32> to vector<8x128xf32>
    %55 = arith.mulf %54, %16 : vector<8x128xf32>
    %56 = arith.addf %52, %55 : vector<8x128xf32>
    %c0_41 = arith.constant 0 : index
    %c2_42 = arith.constant 2 : index
    %c8_43 = arith.constant 8 : index
    %c0_44 = arith.constant 0 : index
    %57 = vector.load %arg6[%c0_41, %c2_42, %c8_43, %c0_44] : memref<1x3x16x128xf32, #tpu.memory_space<vmem>>, vector<1x1x8x128xf32>
    %58 = vector.shape_cast %57 : vector<1x1x8x128xf32> to vector<8x128xf32>
    %59 = arith.mulf %58, %32 : vector<8x128xf32>
    %60 = arith.addf %56, %59 : vector<8x128xf32>
    %61 = tpu.concatenate %46, %60 in 0 : vector<8x128xf32>, vector<8x128xf32> -> vector<16x128xf32>
    %cst_45 = arith.constant 0.000000e+00 : f32
    %62 = vector.broadcast %cst_45 : f32 to vector<16x128xf32>
    %63 = arith.maximumf %61, %62 : vector<16x128xf32>
    %c0_46 = arith.constant 0 : index
    %c0_47 = arith.constant 0 : index
    %c0_48 = arith.constant 0 : index
    %64 = vector.load %arg8[%c0_46, %c0_47, %c0_48] : memref<1x16x16xf32, #tpu.memory_space<vmem>>, vector<1x16x16xf32>
    %65 = vector.shape_cast %64 : vector<1x16x16xf32> to vector<16x16xf32>
    %cst_49 = arith.constant dense<0.000000e+00> : vector<16x128xf32>
    %66 = tpu.matmul %65, %63, %cst_49 {dimension_numbers = #tpu.dot_dimension_numbers<[1], [0], [0], [1], [0, 0, 1, 1], [], []>} : vector<16x16xf32>, vector<16x128xf32>, vector<16x128xf32> -> vector<16x128xf32>
    %c0_50 = arith.constant 0 : index
    %c0_51 = arith.constant 0 : index
    %c0_52 = arith.constant 0 : index
    %67 = vector.load %arg9[%c0_50, %c0_51, %c0_52] : memref<1x16x1xf32, #tpu.memory_space<vmem>>, vector<1x16x1xf32>
    %68 = vector.shape_cast %67 : vector<1x16x1xf32> to vector<16x1xf32>
    %69 = vector.broadcast %68 : vector<16x1xf32> to vector<16x128xf32>
    %70 = arith.addf %66, %69 : vector<16x128xf32>
    %cst_53 = arith.constant 0.000000e+00 : f32
    %71 = vector.broadcast %cst_53 : f32 to vector<16x128xf32>
    %72 = arith.maximumf %70, %71 : vector<16x128xf32>
    %c1_i32_54 = arith.constant 1 : i32
    %73 = tpu.dynamic_rotate %72 by %c1_i32_54 dim 1 : vector<16x128xf32>, i32 -> vector<16x128xf32>
    %c1_i32_55 = arith.constant 1 : i32
    %74 = vector.broadcast %c1_i32_55 : i32 to vector<1x128xi32>
    %75 = arith.cmpi sge, %3, %74 : vector<1x128xi32>
    %cst_56 = arith.constant 0.000000e+00 : f32
    %76 = vector.shape_cast %75 : vector<1x128xi1> to vector<1x128xi1>
    %77 = vector.broadcast %76 : vector<1x128xi1> to vector<16x128xi1>
    %78 = vector.broadcast %cst_56 : f32 to vector<16x128xf32>
    %79 = arith.select %77, %73, %78 : vector<16x128xi1>, vector<16x128xf32>
    %c127_i32_57 = arith.constant 127 : i32
    %80 = tpu.dynamic_rotate %72 by %c127_i32_57 dim 1 : vector<16x128xf32>, i32 -> vector<16x128xf32>
    %c63_i32_58 = arith.constant 63 : i32
    %81 = vector.broadcast %c63_i32_58 : i32 to vector<1x128xi32>
    %82 = arith.cmpi slt, %3, %81 : vector<1x128xi32>
    %cst_59 = arith.constant 0.000000e+00 : f32
    %83 = vector.shape_cast %82 : vector<1x128xi1> to vector<1x128xi1>
    %84 = vector.broadcast %83 : vector<1x128xi1> to vector<16x128xi1>
    %85 = vector.broadcast %cst_59 : f32 to vector<16x128xf32>
    %86 = arith.select %84, %80, %85 : vector<16x128xi1>, vector<16x128xf32>
    %87 = tpu.concatenate %79, %72, %86 in 0 : vector<16x128xf32>, vector<16x128xf32>, vector<16x128xf32> -> vector<48x128xf32>
    %c0_60 = arith.constant 0 : index
    %c0_61 = arith.constant 0 : index
    %c0_62 = arith.constant 0 : index
    %88 = vector.load %arg10[%c0_60, %c0_61, %c0_62] : memref<1x16x48xf32, #tpu.memory_space<vmem>>, vector<1x16x48xf32>
    %89 = vector.shape_cast %88 : vector<1x16x48xf32> to vector<16x48xf32>
    %cst_63 = arith.constant dense<0.000000e+00> : vector<16x128xf32>
    %90 = tpu.matmul %89, %87, %cst_63 {dimension_numbers = #tpu.dot_dimension_numbers<[1], [0], [0], [1], [0, 0, 1, 1], [], []>} : vector<16x48xf32>, vector<48x128xf32>, vector<16x128xf32> -> vector<16x128xf32>
    %c0_64 = arith.constant 0 : index
    %c0_65 = arith.constant 0 : index
    %c0_66 = arith.constant 0 : index
    %91 = vector.load %arg11[%c0_64, %c0_65, %c0_66] : memref<1x16x1xf32, #tpu.memory_space<vmem>>, vector<1x16x1xf32>
    %92 = vector.shape_cast %91 : vector<1x16x1xf32> to vector<16x1xf32>
    %93 = vector.broadcast %92 : vector<16x1xf32> to vector<16x128xf32>
    %94 = arith.addf %90, %93 : vector<16x128xf32>
    %95 = vector.extract_strided_slice %94 {offsets = [0, 0], sizes = [8, 128], strides = [1, 1]} : vector<16x128xf32> to vector<8x128xf32>
    %cst_67 = arith.constant 2.000000e+00 : f32
    %96 = vector.broadcast %cst_67 : f32 to vector<8x128xf32>
    %97 = arith.addf %95, %96 : vector<8x128xf32>
    %cst_68 = arith.constant 0.000000e+00 : f32
    %98 = vector.broadcast %cst_68 : f32 to vector<8x128xf32>
    %99 = arith.subf %98, %97 : vector<8x128xf32>
    %100 = math.exp %99 : vector<8x128xf32>
    %cst_69 = arith.constant 1.000000e+00 : f32
    %101 = vector.broadcast %cst_69 : f32 to vector<8x128xf32>
    %102 = arith.addf %101, %100 : vector<8x128xf32>
    %103 = tpu.reciprocal %102 : vector<8x128xf32> -> vector<8x128xf32>
    %cst_70 = arith.constant 1.000000e-07 : f32
    %104 = vector.broadcast %cst_70 : f32 to vector<8x128xf32>
    %105 = arith.addf %103, %104 : vector<8x128xf32>
    %106 = vector.extract_strided_slice %94 {offsets = [8, 0], sizes = [8, 128], strides = [1, 1]} : vector<16x128xf32> to vector<8x128xf32>
    %107 = arith.addf %17, %106 : vector<8x128xf32>
    %108 = arith.mulf %105, %107 : vector<8x128xf32>
    %c8_71 = arith.constant 8 : index
    %c0_72 = arith.constant 0 : index
    %109 = vector.load %arg12[%c8_71, %c0_72] : memref<16x128xf32, #tpu.memory_space<vmem>>, vector<8x128xf32>
    tpu.vector_store %arg12[%c8_71, %c0_72], %108 {strides = array<i32>} : memref<16x128xf32, #tpu.memory_space<vmem>>, vector<8x128xf32>,
    %c0_73 = arith.constant 0 : index
    %c0_74 = arith.constant 0 : index
    %110 = vector.load %arg13[%c0_73, %c0_74] : memref<1x128xf32, #tpu.memory_space<vmem>>, vector<1x128xf32>
    %111 = math.log %105 : vector<8x128xf32>
    %cst_75 = arith.constant dense<0.000000e+00> : vector<128xf32>
    %112 = vector.multi_reduction <add>, %111, %cst_75 [0] : vector<8x128xf32> to vector<128xf32>
    %113 = vector.shape_cast %112 : vector<128xf32> to vector<1x128xf32>
    %114 = arith.addf %110, %113 : vector<1x128xf32>
    %c0_76 = arith.constant 0 : index
    %c0_77 = arith.constant 0 : index
    %115 = vector.load %arg13[%c0_76, %c0_77] : memref<1x128xf32, #tpu.memory_space<vmem>>, vector<1x128xf32>
    tpu.vector_store %arg13[%c0_76, %c0_77], %114 {strides = array<i32>} : memref<1x128xf32, #tpu.memory_space<vmem>>, vector<1x128xf32>,
    return
  }
  func.func @transform_0(%arg0: i32) -> (i32, i32) {
    %c0_i32 = arith.constant 0 : i32
    %c0_i32_0 = arith.constant 0 : i32
    %c0_i32_1 = arith.constant 0 : i32
    return %c0_i32, %c0_i32_0 : i32, i32
  }
  func.func @transform_1(%arg0: i32) -> (i32, i32) {
    %c0_i32 = arith.constant 0 : i32
    %c0_i32_0 = arith.constant 0 : i32
    %c0_i32_1 = arith.constant 0 : i32
    return %c0_i32, %c0_i32_0 : i32, i32
  }
  func.func @transform_2(%arg0: i32) -> (i32, i32, i32) {
    %c0_i32 = arith.constant 0 : i32
    %c0_i32_0 = arith.constant 0 : i32
    %c0_i32_1 = arith.constant 0 : i32
    return %arg0, %c0_i32, %c0_i32_0 : i32, i32, i32
  }
  func.func @transform_3(%arg0: i32) -> (i32, i32, i32) {
    %c0_i32 = arith.constant 0 : i32
    %c0_i32_0 = arith.constant 0 : i32
    %c0_i32_1 = arith.constant 0 : i32
    return %arg0, %c0_i32, %c0_i32_0 : i32, i32, i32
  }
  func.func @transform_4(%arg0: i32) -> (i32, i32, i32) {
    %c0_i32 = arith.constant 0 : i32
    %c0_i32_0 = arith.constant 0 : i32
    %c0_i32_1 = arith.constant 0 : i32
    return %arg0, %c0_i32, %c0_i32_0 : i32, i32, i32
  }
  func.func @transform_5(%arg0: i32) -> (i32, i32, i32, i32) {
    %c0_i32 = arith.constant 0 : i32
    %c0_i32_0 = arith.constant 0 : i32
    %c0_i32_1 = arith.constant 0 : i32
    %c0_i32_2 = arith.constant 0 : i32
    return %arg0, %c0_i32, %c0_i32_0, %c0_i32_1 : i32, i32, i32, i32
  }
  func.func @transform_6(%arg0: i32) -> (i32, i32, i32) {
    %c0_i32 = arith.constant 0 : i32
    %c0_i32_0 = arith.constant 0 : i32
    %c0_i32_1 = arith.constant 0 : i32
    return %arg0, %c0_i32, %c0_i32_0 : i32, i32, i32
  }
  func.func @transform_7(%arg0: i32) -> (i32, i32, i32) {
    %c0_i32 = arith.constant 0 : i32
    %c0_i32_0 = arith.constant 0 : i32
    %c0_i32_1 = arith.constant 0 : i32
    return %arg0, %c0_i32, %c0_i32_0 : i32, i32, i32
  }
  func.func @transform_8(%arg0: i32) -> (i32, i32, i32) {
    %c0_i32 = arith.constant 0 : i32
    %c0_i32_0 = arith.constant 0 : i32
    %c0_i32_1 = arith.constant 0 : i32
    return %arg0, %c0_i32, %c0_i32_0 : i32, i32, i32
  }
  func.func @transform_9(%arg0: i32) -> (i32, i32, i32) {
    %c0_i32 = arith.constant 0 : i32
    %c0_i32_0 = arith.constant 0 : i32
    %c0_i32_1 = arith.constant 0 : i32
    return %arg0, %c0_i32, %c0_i32_0 : i32, i32, i32
  }
  func.func @transform_10(%arg0: i32) -> (i32, i32, i32) {
    %c0_i32 = arith.constant 0 : i32
    %c0_i32_0 = arith.constant 0 : i32
    %c0_i32_1 = arith.constant 0 : i32
    return %arg0, %c0_i32, %c0_i32_0 : i32, i32, i32
  }
  func.func @transform_11(%arg0: i32) -> (i32, i32) {
    %c0_i32 = arith.constant 0 : i32
    %c0_i32_0 = arith.constant 0 : i32
    %c0_i32_1 = arith.constant 0 : i32
    return %c0_i32, %c0_i32_0 : i32, i32
  }
  func.func @transform_12(%arg0: i32) -> (i32, i32) {
    %c0_i32 = arith.constant 0 : i32
    %c0_i32_0 = arith.constant 0 : i32
    %c0_i32_1 = arith.constant 0 : i32
    return %c0_i32, %c0_i32_0 : i32, i32
  }
}

</mosaic_0001>

<bundles_post_ra>
// kernel: block_forward_impl.1
= control target key start
LH: loop header
LB: loop body
LE: loop exit
PB: predicated region body
PF: predicated region fallthrough
CT: control target
= control target key end

     0   :  { %s1269_s21 = smov 0   ;;  %s1420_s0 = inlined_call_operand.vmem [shape: f32[16,128], index: 0, kind: input, shape index: {}]   ;;  %s1421_s1 = inlined_call_operand.vmem [shape: s32[1,128], index: 1, kind: input, shape index: {}]   ;;  %s1422_s2 = inlined_call_operand.vmem [shape: f32[2,16,16], index: 2, kind: input, shape index: {}]   ;;  %s1423_s3 = inlined_call_operand.vmem [shape: f32[2,16,1], index: 3, kind: input, shape index: {}]   ;;  %s1424_s4 = inlined_call_operand.vmem [shape: f32[2,16,1], index: 4, kind: input, shape index: {}]   ;;  %s1425_s5 = inlined_call_operand.vmem [shape: f32[2,3,16,128], index: 5, kind: input, shape index: {}]   ;;  %s1426_s6 = inlined_call_operand.vmem [shape: f32[2,16,128], index: 6, kind: input, shape index: {}]   ;;  %s1427_s7 = inlined_call_operand.vmem [shape: f32[2,16,16], index: 7, kind: input, shape index: {}]   ;;  %s1428_s8 = inlined_call_operand.vmem [shape: f32[2,16,1], index: 8, kind: input, shape index: {}]   ;;  %s1429_s9 = inlined_call_operand.vmem [shape: f32[2,16,48], index: 9, kind: input, shape index: {}]   ;;  %s1430_s10 = inlined_call_operand.vmem [shape: f32[2,16,1], index: 10, kind: input, shape index: {}]   ;;  %s1431_s11 = inlined_call_operand.vmem [shape: f32[16,128], index: 11, kind: output, shape index: {0}]   ;;  %s1432_s12 = inlined_call_operand.vmem [shape: f32[1,128], index: 12, kind: output, shape index: {1}]  }
   0x1   :  { %1433 = sst [smem:[#allocation2_spill]] %s1422_s2 }
   0x2   :  { %1434 = sst [smem:[#allocation3_spill]] %s1423_s3 }
   0x3   :  { %1435 = sst [smem:[#allocation4_spill]] %s1424_s4 }
   0x4   :  { %1436 = sst [smem:[#allocation5_spill]] %s1425_s5 }
   0x5 LB: > { %s1080_s22 = sadd.s32 4294967295, %s1198_s21   ;;  %p1083_p0 = scmp.ge.s32.totalorder %s1198_s21, 1  ;;  %s1198_s21 = sphi %s1269_s21, %s23_s21  }
   0x6   : > { %p435_p1 = scmp.lt.s32.totalorder %s1198_s21, 3 }
   0x8   : > { %p436_p2 = pnand %p1083_p0, %p435_p1 }
   0x9   : > { %p512_p3 = scmp.lt.s32.totalorder (!%p436_p2), %s1080_s22, 1  ;;  %s1437_s2 = sld [smem:[#allocation2_spill]] (!%p436_p2) }
   0xa   : > { %439 = sbr.rel (%p436_p2) target bundleno = 959 (0x3bf), region = 64  ;;  %s1438_s3 = sld [smem:[#allocation3_spill]] (!%p436_p2) }
   0xb   : > { %s1439_s4 = sld [smem:[#allocation4_spill]] (!%p436_p2)  ;;  %p1101_p4 = scmp.ne.s32.totalorder (!%p436_p2), %s1080_s22, 0 }
   0xc   : > { %s1440_s5 = sld [smem:[#allocation5_spill]] (!%p436_p2) }
   0xf   : > { %s513_s23 = scalar_select %p512_p3, %s1080_s22, 1 }
  0x11   : > { %s1118_s24 = sshll.u32 %s513_s23, 4  ;;  %s1171_s25 = smul.u32 48, %s513_s23 }
  0x12   : > { %s516_s28 = scalar_lea.vmem %s1437_s2, %s1118_s24  ;;  %s1283_s13 = scalar_lea.vmem %s1438_s3, %s1118_s24 }
  0x13   : > { %s1288_s16 = scalar_lea.vmem %s1439_s4, %s1118_s24  ;;  %s1293_s19 = scalar_lea.vmem %s1440_s5, %s1171_s25 }
  0x14   : > { %s1298_s26 = scalar_lea.vmem %s1426_s6, %s1118_s24  ;;  %s1303_s29 = scalar_lea.vmem %s1427_s7, %s1118_s24 }
  0x15   : > { %s1308_s14 = scalar_lea.vmem %s1428_s8, %s1118_s24  ;;  %s1313_s25 = scalar_lea.vmem %s1429_s9, %s1118_s24 }
  0x16   : > { %s1318_s20 = scalar_lea.vmem %s1430_s10, %s1118_s24  ;;  %560 = sbr.rel (%p1101_p4) target bundleno = 30 (0x1e), region = 68 }
  0x1b   : > { %v561_v0 = vld [vmem:[%s1420_s0] sm:$0xff]  ;;  %v562_v1 = vld [vmem:[%s1420_s0 + $0x8] sm:$0xff]  ;;  %v1200_v2 = vmov 0.0  }
  0x1c   : > { %563 = vst [vmem:[%s1431_s11] sm:$0xff] %v561_v0  ;;  %564 = vst [vmem:[%s1431_s11 + $0x8] sm:$0xff] %v562_v1 }
  0x1d   : > { %565 = vst [vmem:[%s1432_s12] sm:$0x1] %v1200_v2 }
  0x1e PF: > { %v569_v5 = vld [vmem:[%s516_s28] sm:$0xff]  ;;  %vm585_vm0 = vcmask 130048   ;;  %v570_v7 = vld [vmem:[%s516_s28 + $0x8] sm:$0xff]  ;;  %v1201_v8 = vmov 0   ;;  %s1202_s27 = smov 1   ;;  %s1203_s3 = smov 127   ;;  %v684_v19 = vlaneseq }
  0x1f   : > { %1146 = vmatprep.mubr.msk.f32.mxu1 %vm585_vm0, %v569_v5  ;;  %v573_v6 = vld [vmem:[%s1283_s13] sm:$0xff]  ;;  %1184 = vset.pattern.permute.xlu0 %v1201_v8  ;;  %v727_v10 = vld [vmem:[%s1308_s14 + $0x8] sm:$0xff]  ;;  %v1104_v30 = vld [vmem:[%s1293_s19 + $0x10] sm:$0xff]  ;;  %vm847_vm5 = vcmask 392192  }
  0x20   : > { %577 = vperm.xlu0 %1184, %v573_v6   ;;  %v571_v9 = vld [vmem:[%s1288_s16] sm:$0xff]  ;;  %1185 = vset.pattern.permute.xlu1 %v1201_v8  ;;  %v685_v21 = vshrl.u32 %v684_v19, 7  ;;  %v713_v28 = vld [vmem:[%s1293_s19 + $0x8] sm:$0xff]  ;;  %v1106_v34 = vld [vmem:[%s1293_s19 + $0x18] sm:$0xff] }
  0x21   : > { %v724_v17 = vld [vmem:[%s1303_s29] sm:$0xff]  ;;  %v712_v32 = vld [vmem:[%s1298_s26 + $0x8] sm:$0xff] }
  0x22   : > { %v726_v18 = vld [vmem:[%s1308_s14] sm:$0xff]  ;;  %v686_v22 = vsub.s32 0, %v685_v21  ;;  %v1107_v38 = vld [vmem:[%s1293_s19 + $0x28] sm:$0xff] }
  0x23   : > { %v568_v3 = vld [vmem:[%s1431_s11 + $0x8] sm:$0xff]  ;;  %v567_v4 = vld [vmem:[%s1431_s11] sm:$0xff] }
  0x24   : > { %1142 = vmatprep.subr.mxu1 %v568_v3  ;;  %669 = vperm.xlu0 %1184, %v571_v9   ;;  %v566_v20 = vld [vmem:[%s1421_s1] sm:$0x1]  ;;  %v725_v53 = vld [vmem:[%s1303_s29 + $0x8] sm:$0xff] }
  0x25   : > { %1143 = vmatpush3.msra.mxu1 %v568_v3  ;;  %vm682_vm1 = vcmp.ge.s32.totalorder %v566_v20, 1  ;;  %vm692_vm2 = vcmp.lt.s32.totalorder %v566_v20, 63  ;;  %v701_v27 = vld [vmem:[%s1293_s19] sm:$0xff]  ;;  %v574_v0 = vld [vmem:[%s1283_s13 + $0x8] sm:$0xff] }
  0x26   : > { %1144 = vmatprep.subr.mxu1 %v567_v4  ;;  %v683_v23 = vsel %vm682_vm1, 1, %v1201_v8  ;;  %v693_v25 = vsel %vm692_vm2, 1, %v1201_v8  ;;  %v700_v31 = vld [vmem:[%s1298_s26] sm:$0xff]  ;;  %v572_v1 = vld [vmem:[%s1288_s16 + $0x8] sm:$0xff] }
  0x27   : > { %1145 = vmatpush3.msra.mxu1 %v567_v4  ;;  %v1359_v24 = vrot.slane %v683_v23, %v686_v22  ;;  %v1362_v26 = vrot.slane %v693_v25, %v686_v22  ;;  %v1105_v37 = vld [vmem:[%s1293_s19 + $0x20] sm:$0xff]  ;;  %v836_v2 = vld [vmem:[%s1318_s20 + $0x8] sm:$0xff] }
  0x28   : > { %1147 = vmatmul.mubr.msk.f32.vlgmr.msra.gmra.mxu1 %vm585_vm0, %v570_v7  ;;  %735 = vperm.xlu0 %1184, %v727_v10   ;;  %v833_v59 = vld [vmem:[%s1313_s25] sm:$0xff]  ;;  %v834_v7 = vld [vmem:[%s1313_s25 + $0x8] sm:$0xff] }
  0x29   : > { %1153 = vmatprep.mubr.msk.f32.mxu1 %vm585_vm0, %v724_v17  ;;  %vm688_vm3 = vcmp.eq.s32.totalorder %v1359_v24, 1  ;;  %vm698_vm4 = vcmp.eq.s32.totalorder %v1362_v26, 1  ;;  %1168 = vmatprep.mubr.msk.f32.mxu0 %vm847_vm5, %v833_v59  ;;  %v835_v63 = vld [vmem:[%s1318_s20] sm:$0xff] }
  0x9b   : > { %v578_v11 = vpop.permute.xlu0 %577 }
  0x9f   : > { %v670_v15 = vpop.permute.xlu0 %669 }
  0xa3   : > { %v736_v54 = vpop.permute.xlu0 %735 }
  0xe8   : > { %v1346_v12 = vpop.f32.mrf.mxu1 }
  0xea   : > { %v658_v13 = vpop.f32.mrf.mxu1 }
  0xeb   : > { %v659_v14 = vadd.f32 %v658_v13, %v578_v11 }
  0xed   : > { %v677_v16 = vmul.f32 %v670_v15, %v659_v14 }
  0xef   : > { %679 = vst [vmem:[%s1431_s11] sm:$0xff] %v677_v16  ;;  %680 = vrot.lane.b32.xlu1 %v677_v16, %s1202_s27  ;;  %v706_v42 = vmul.f32 %v1104_v30, %v677_v16  ;;  %v717_v43 = vmul.f32 %v1106_v34, %v677_v16  ;;  %v939_v34 = vld [vmem:[%s1432_s12] sm:$0x1] }
  0xf3   : > { %690 = vrot.lane.b32.xlu1 %v677_v16, %s1203_s3 }
  0xf7   : > { %730 = vperm.xlu1 %1185, %v726_v18  }
 0x161   : > { %v681_v29 = vpop.permute.xlu1 %680 }
 0x162   : > { %v689_v33 = vsel %vm688_vm3, %v681_v29, 0.0 }
 0x163   : > { %v702_v35 = vmul.f32 %v701_v27, %v689_v33  ;;  %v714_v36 = vmul.f32 %v713_v28, %v689_v33 }
 0x165   : > { %v703_v39 = vadd.f32 %v702_v35, %v700_v31  ;;  %v715_v40 = vadd.f32 %v714_v36, %v712_v32  ;;  %v691_v41 = vpop.permute.xlu1 %690 }
 0x166   : > { %v699_v44 = vsel %vm698_vm4, %v691_v41, 0.0 }
 0x167   : > { %v707_v45 = vadd.f32 %v706_v42, %v703_v39  ;;  %v710_v46 = vmul.f32 %v1105_v37, %v699_v44  ;;  %v718_v47 = vadd.f32 %v717_v43, %v715_v40  ;;  %v720_v48 = vmul.f32 %v1107_v38, %v699_v44 }
 0x169   : > { %v711_v49 = vadd.f32 %v710_v46, %v707_v45  ;;  %v721_v50 = vadd.f32 %v720_v48, %v718_v47 }
 0x16b   : > { %v723_v51 = vmax.f32 %v721_v50, 0.0  ;;  %v722_v52 = vmax.f32 %v711_v49, 0.0 }
 0x16d   : > { %1149 = vmatprep.subr.mxu1 %v723_v51 }
 0x16e   : > { %1150 = vmatpush3.msra.mxu1 %v723_v51 }
 0x16f   : > { %1151 = vmatprep.subr.mxu1 %v722_v52 }
 0x170   : > { %1152 = vmatpush3.msra.mxu1 %v722_v52 }
 0x171   : > { %1154 = vmatmul.mubr.msk.f32.vlgmr.msra.gmra.mxu1 %vm585_vm0, %v725_v53 }
 0x172   : > { %v731_v56 = vpop.permute.xlu1 %730 }
 0x231   : > { %v1155_v55 = vpop.f32.mrf.mxu1 }
 0x232   : > { %v816_v57 = vadd.f32 %v1155_v55, %v736_v54 }
 0x233   : > { %v810_v58 = vpop.f32.mrf.mxu1 }
 0x234   : > { %v820_v60 = vmax.f32 %v816_v57, 0.0  ;;  %v811_v61 = vadd.f32 %v810_v58, %v731_v56 }
 0x236   : > { %v819_v62 = vmax.f32 %v811_v61, 0.0  ;;  %829 = vrot.lane.b32.xlu0 %v820_v60, %s1203_s3 }
 0x238   : > { %827 = vrot.lane.b32.xlu1 %v819_v62, %s1203_s3 }
 0x23a   : > { %823 = vrot.lane.b32.xlu0 %v820_v60, %s1202_s27 }
 0x23c   : > { %821 = vrot.lane.b32.xlu1 %v819_v62, %s1202_s27 }
 0x23e   : > { %839 = vperm.xlu0 %1184, %v835_v63  }
 0x240   : > { %582 = vperm.xlu1 %1185, %v574_v0  }
 0x242   : > { %674 = vperm.xlu0 %1184, %v572_v1  }
 0x244   : > { %844 = vperm.xlu1 %1185, %v836_v2  }
 0x2a8   : > { %v830_v3 = vpop.permute.xlu0 %829 }
 0x2a9   : > { %1156 = vmatprep.subr.msk.mxu0 %vm698_vm4, %v830_v3 }
 0x2aa   : > { %1157 = vmatpush3.msk.msra.mxu0 %vm698_vm4, %v830_v3  ;;  %v828_v4 = vpop.permute.xlu1 %827 }
 0x2ab   : > { %1158 = vmatprep.subr.msk.mxu0 %vm698_vm4, %v828_v4 }
 0x2ac   : > { %1159 = vmatpush3.msk.msra.mxu0 %vm698_vm4, %v828_v4  ;;  %v824_v5 = vpop.permute.xlu0 %823 }
 0x2ad   : > { %1160 = vmatprep.subr.mxu0 %v820_v60 }
 0x2ae   : > { %1161 = vmatpush3.msra.mxu0 %v820_v60  ;;  %v822_v6 = vpop.permute.xlu1 %821 }
 0x2af   : > { %1162 = vmatprep.subr.mxu0 %v819_v62 }
 0x2b0   : > { %1163 = vmatpush3.msra.mxu0 %v819_v62 }
 0x2b1   : > { %1164 = vmatprep.subr.msk.mxu0 %vm688_vm3, %v824_v5 }
 0x2b2   : > { %1165 = vmatpush3.msk.msra.mxu0 %vm688_vm3, %v824_v5 }
 0x2b3   : > { %1166 = vmatprep.subr.msk.mxu0 %vm688_vm3, %v822_v6 }
 0x2b4   : > { %1167 = vmatpush3.msk.msra.mxu0 %vm688_vm3, %v822_v6 }
 0x2b5   : > { %1169 = vmatmul.mubr.msk.f32.vlgmr.msra.gmra.mxu0 %vm847_vm5, %v834_v7 }
 0x2b9   : > { %v840_v9 = vpop.permute.xlu0 %839 }
 0x2bb   : > { %v583_v18 = vpop.permute.xlu1 %582 }
 0x2bc   : > { %v664_v19 = vadd.f32 %v1346_v12, %v583_v18 }
 0x2bd   : > { %v675_v20 = vpop.permute.xlu0 %674 }
 0x2be   : > { %v678_v23 = vmul.f32 %v675_v20, %v664_v19 }
 0x2bf   : > { %v845_v21 = vpop.permute.xlu1 %844 }
 0x375   : > { %v1170_v8 = vpop.f32.mrf.mxu0 }
 0x376   : > { %v926_v22 = vadd.f32 %v1170_v8, %v845_v21 }
 0x377   : > { %v920_v10 = vpop.f32.mrf.mxu0 }
 0x378   : > { %v921_v11 = vadd.f32 %v920_v10, %v840_v9  ;;  %v936_v25 = vadd.f32 %v926_v22, %v678_v23 }
 0x37a   : > { %v929_v13 = vadd.f32 2.0, %v921_v11 }
 0x37c   : > { %v930_v14 = vsub.f32 0.0, %v929_v13 }
 0x37e   : > { %v931_v15 = vmul.f32 1.442695, %v930_v14 }
 0x380   : > { %1186 = vpow2.f32 %v931_v15 }
 0x38d   : > { %v1187_v16 = vpop.eup %1186 }
 0x38e   : > { %v933_v17 = vadd.f32 1.0, %v1187_v16 }
 0x390   : > { %1188 = vrcp.f32 %v933_v17 }
 0x39d   : > { %v1189_v24 = vpop.eup %1188 }
 0x39e   : > { %v935_v26 = vadd.f32 1e-07, %v1189_v24 }
 0x3a0   : > { %v937_v27 = vmul.f32 %v936_v25, %v935_v26  ;;  %1190 = vlog2.f32 %v935_v26 }
 0x3a2   : > { %938 = vst [vmem:[%s1431_s11 + $0x8] sm:$0xff] %v937_v27 }
 0x3ad   : > { %v1191_v28 = vpop.eup %1190 }
 0x3ae   : > { %v941_v29 = vmul.f32 0.6931472, %v1191_v28 }
 0x3b0   : > { %v942_v30 = vrot.slane %v941_v29, 4 }
 0x3b2   : > { %v943_v31 = vadd.f32 %v942_v30, %v941_v29 }
 0x3b4   : > { %v944_v32 = vrot.slane %v943_v31, 2 }
 0x3b6   : > { %v945_v33 = vadd.f32 %v944_v32, %v943_v31 }
 0x3b8   : > { %v946_v12 = vrot.slane %v945_v33, 1 }
 0x3ba   : > { %v947_v35 = vadd.f32 %v946_v12, %v945_v33 }
 0x3bc   : > { %v948_v36 = vadd.f32 %v947_v35, %v939_v34 }
 0x3be   : > { %949 = vst [vmem:[%s1432_s12] sm:$0x1] %v948_v36 }
 0x3bf PF: > { %s23_s21 = sadd.s32 1, %s1198_s21  }
 0x3c0   : > { %p20_p5 = scmp.ge.s32.totalorder %s23_s21, 4  }
 0x3c2   :  { %22 = sbr.rel (!%p20_p5) target bundleno = 5 (0x5), region = 128 }

</bundles_post_ra>
